<compile_context>
chip_gen: v7x
topology: tpu7x:2x2x1
jax: 0.10.0
libtpu: 0.0.40
codegen_flags: <defaults>
</compile_context>

<pallas_src>
import functools

import jax
import jax.numpy as jnp
import numpy as np
from jax.experimental import pallas as pl
from jax.experimental.pallas import tpu as pltpu

TOK_BLOCK = 512      # default max token rows per grid step (matmul path)
VOCAB_BLOCK = 512    # vocab (matmul-K) tile, multiple of 256 for the v6e/v7x MXU


def _round_up(x, m):
    return ((x + m - 1) // m) * m


def _vmem_cap_bytes():
    """Physical per-core VMEM minus headroom for Mosaic internals / spills."""
    try:
        phys = int(pltpu.get_tpu_info().vmem_capacity_bytes)
    except Exception:  # conservative fallback: v7x per-TC size
        phys = 64 << 20
    return max(phys - (16 << 20), 24 << 20)


# ----------------------------------------------------------------------------
# Path 1: vocab-tiled one-hot @ table matmul (MXU)
# ----------------------------------------------------------------------------
def _embed_onehot_kernel(tok_ref, table_ref, out_ref, acc_ref, *, precision):
    # tok_ref   : VMEM (tb, 1)       int32 token ids for this token tile
    # table_ref : VMEM (kt, size_p)  one vocab block of the table
    # out_ref   : VMEM (tb, size_p)  gathered embeddings (written at last k)
    # acc_ref   : VMEM (tb, size_p)  f32 accumulator, resident across k
    k = pl.program_id(1)

    @pl.when(k == 0)
    def _init():
        acc_ref[...] = jnp.zeros_like(acc_ref)

    tb = tok_ref.shape[0]
    kt = table_ref.shape[0]
    # Block-local one-hot built directly in the matmul dtype.  Ids that do not
    # fall in this vocab block (or are out of range) give all-zero rows, so
    # there is never an out-of-bounds access.
    tok_local = tok_ref[...] - k * kt                           # (tb, 1) int32
    col = jax.lax.broadcasted_iota(jnp.int32, (tb, kt), 1)      # block-local cols
    one_hot = (col == tok_local).astype(table_ref.dtype)        # exact 0/1
    acc_ref[...] += jnp.dot(one_hot, table_ref[...],
                            preferred_element_type=jnp.float32,
                            precision=precision)

    @pl.when(k == pl.num_programs(1) - 1)
    def _finalize():
        out_ref[...] = acc_ref[...].astype(out_ref.dtype)


def _embed_matmul(flat, table, *, tok_block):
    n = flat.shape[0]
    vocab, size = table.shape
    dtype = table.dtype
    dbytes = jnp.dtype(dtype).itemsize

    # --- MXU-friendly padding (lane-dense output, 256-aligned K) -------------
    size_p = _round_up(size, 128)
    kt = VOCAB_BLOCK if vocab > VOCAB_BLOCK else _round_up(vocab, 256)
    vocab_p = _round_up(vocab, kt)
    if (vocab_p, size_p) != (vocab, size):
        table = jnp.pad(table, ((0, vocab_p - vocab), (0, size_p - size)))

    # --- token tiling ---------------------------------------------------------
    # Keep at least two token tiles for largish inputs so the "parallel" axis
    # actually gives both v7x TensorCores work; tiny inputs get one small tile.
    if n >= 16:
        tb = min(tok_block, max(8, _round_up((n + 1) // 2, 8)))
    else:
        tb = _round_up(max(n, 1), 8)

    cap = _vmem_cap_bytes()

    def vmem_need(tb_):
        return (2 * kt * size_p * dbytes        # table block (double-buffered)
                + 2 * tb_ * size_p * dbytes     # output tile (double-buffered)
                + tb_ * size_p * 4              # f32 accumulator scratch
                + 2 * tb_ * 128 * 4             # (tb,1) id tile pads to 128 lanes
                + 3 * tb_ * kt * 4              # iota / mask / one-hot temporaries
                + (4 << 20))                    # slack for Mosaic internals

    while vmem_need(tb) > cap and tb > 8:
        tb = max(8, tb // 2)

    n_pad = _round_up(n, tb)
    if n_pad != n:
        # Padded ids are 0 and gather table row 0; those rows are sliced off
        # below (do NOT rely on padded rows being zero).
        flat = jnp.pad(flat, (0, n_pad - n))
    tok2d = flat.reshape(n_pad, 1)

    n_tiles = n_pad // tb
    grid = (n_tiles, vocab_p // kt)

    # f32 tables: force the exact multi-pass MXU algorithm so the gather stays
    # bit-exact; bf16 tables already gather exactly at full MXU rate.
    precision = jax.lax.Precision.HIGHEST if dtype == jnp.float32 else None

    table_bytes = vocab_p * size_p * dbytes
    cost = pl.CostEstimate(
        flops=2 * n_pad * vocab_p * size_p,
        transcendentals=0,
        bytes_accessed=n_tiles * table_bytes + n_pad * 4 + n_pad * size_p * dbytes,
    )

    out = pl.pallas_call(
        functools.partial(_embed_onehot_kernel, precision=precision),
        out_shape=jax.ShapeDtypeStruct((n_pad, size_p), dtype),
        grid_spec=pltpu.PrefetchScalarGridSpec(
            num_scalar_prefetch=0,
            grid=grid,
            in_specs=[
                pl.BlockSpec((tb, 1), lambda i, k: (i, 0)),        # token ids
                pl.BlockSpec((kt, size_p), lambda i, k: (k, 0)),   # vocab block
            ],
            out_specs=pl.BlockSpec((tb, size_p), lambda i, k: (i, 0)),
            scratch_shapes=[pltpu.VMEM((tb, size_p), jnp.float32)],
        ),
        compiler_params=pltpu.CompilerParams(
            dimension_semantics=("parallel", "arbitrary"),
            vmem_limit_bytes=int(min(cap, max(vmem_need(tb), 32 << 20))),
        ),
        cost_estimate=cost,
    )(tok2d, table)

    return out[:n, :size]


# ----------------------------------------------------------------------------
# Path 2: streaming DMA row-gather for tables that do not fit in VMEM
# ----------------------------------------------------------------------------
def _gather_stream_kernel(ids_ref, row_ref, out_ref):
    # ids_ref : SMEM (n,) int32 scalar-prefetched ids (consumed by index_maps)
    # row_ref : VMEM (1, size) the table row DMA'd in for this grid step
    # out_ref : VMEM (1, size)
    del ids_ref
    out_ref[...] = row_ref[...]


def _embed_stream(flat, table):
    # TODO(synk): batch several rows per grid step with a manual double-buffered
    # DMA gather to amortize the ~0.35us per-grid-step overhead on long streams.
    n = flat.shape[0]
    vocab, size = table.shape
    dbytes = jnp.dtype(table.dtype).itemsize
    # Clamp so a bad id can never address outside the table (nn.Embedding would
    # raise; here out-of-range ids return the clamped row).
    ids = jnp.clip(flat, 0, vocab - 1)

    cost = pl.CostEstimate(
        flops=0,
        transcendentals=0,
        bytes_accessed=n * 4 + 2 * n * size * dbytes,
    )
    return pl.pallas_call(
        _gather_stream_kernel,
        out_shape=jax.ShapeDtypeStruct((n, size), table.dtype),
        grid_spec=pltpu.PrefetchScalarGridSpec(
            num_scalar_prefetch=1,
            grid=(n,),
            in_specs=[
                # Data-dependent row gather: element offset ids[i] along vocab.
                pl.BlockSpec((pl.Element(1), size), lambda i, ids: (ids[i], 0)),
            ],
            out_specs=pl.BlockSpec((1, size), lambda i, ids: (i, 0)),
        ),
        compiler_params=pltpu.CompilerParams(
            dimension_semantics=("arbitrary",),
            vmem_limit_bytes=32 << 20,
        ),
        cost_estimate=cost,
    )(ids, table)


# ----------------------------------------------------------------------------
# Public entry point (Embed.forward)
# ----------------------------------------------------------------------------
def embed_forward(tokens, table, *, tok_block=TOK_BLOCK, stream=None):
    """Pallas equivalent of Embed.forward: gather table rows for flattened tokens."""
    vocab, size = table.shape
    flat = tokens.reshape(-1).astype(jnp.int32)
    table_bytes = vocab * size * jnp.dtype(table.dtype).itemsize
    if stream is None:
        # Embedding lookup is memory-bound: once the table stops fitting
        # comfortably in VMEM, a direct HBM row gather beats re-streaming the
        # whole table through the MXU for every token tile.
        stream = table_bytes > _vmem_cap_bytes() // 4
    if stream:
        return _embed_stream(flat, table)
    return _embed_matmul(flat, table, tok_block=tok_block)


if __name__ == "__main__":
    key = jax.random.PRNGKey(0)
    k_tab1, k_tok1, k_tab2, k_tok2 = jax.random.split(key, 4)
    batch, seq = 2, 8

    # 1) bf16 table, small vocab (single vocab block) -> exact gather.
    vocab1, size1 = 64, 128
    table1_f32 = jax.random.normal(k_tab1, (vocab1, size1), dtype=jnp.float32)
    table1 = table1_f32.astype(jnp.bfloat16)
    tokens1 = jax.random.randint(k_tok1, (batch, seq), 0, vocab1, dtype=jnp.int32)
    out1 = embed_forward(tokens1, table1)
    jax.block_until_ready(out1)
    ref1 = jnp.take(table1, tokens1.reshape(-1), axis=0)
    assert out1.shape == (batch * seq, size1) and out1.dtype == table1.dtype
    np.testing.assert_array_equal(np.asarray(out1.astype(jnp.float32)),
                                  np.asarray(ref1.astype(jnp.float32)))

    # 2) bf16 table spanning multiple vocab blocks -> exercises the K-tiled
    #    accumulator (init / accumulate / writeback) path.
    vocab2, size2 = 768, 256
    table2 = jax.random.normal(k_tab2, (vocab2, size2), dtype=jnp.float32).astype(jnp.bfloat16)
    tokens2 = jax.random.randint(k_tok2, (batch, seq), 0, vocab2, dtype=jnp.int32)
    out2 = embed_forward(tokens2, table2)
    jax.block_until_ready(out2)
    ref2 = jnp.take(table2, tokens2.reshape(-1), axis=0)
    assert out2.shape == (batch * seq, size2)
    np.testing.assert_array_equal(np.asarray(out2.astype(jnp.float32)),
                                  np.asarray(ref2.astype(jnp.float32)))

    # 3) f32 table through the matmul path (HIGHEST precision -> exact rows).
    out3 = embed_forward(tokens1, table1_f32)
    jax.block_until_ready(out3)
    ref3 = jnp.take(table1_f32, tokens1.reshape(-1), axis=0)
    np.testing.assert_allclose(np.asarray(out3), np.asarray(ref3),
                               rtol=1e-6, atol=1e-6)

    # 4) streaming DMA row-gather path (forced on a small table; large tables
    #    dispatch here automatically) -> exact copy.
    out4 = embed_forward(tokens1, table1_f32, stream=True)
    jax.block_until_ready(out4)
    np.testing.assert_array_equal(np.asarray(out4), np.asarray(ref3))

    print("KERNEL_OK")
</pallas_src>

<mosaic_0001>
module attributes {stable_mosaic.version = 11 : i64} {
  func.func @_embed_onehot_kernel(%arg0: i32, %arg1: i32, %arg2: memref<8x1xi32, #tpu.memory_space<vmem>>, %arg3: memref<256x128xbf16, #tpu.memory_space<vmem>>, %arg4: memref<8x128xbf16, #tpu.memory_space<vmem>>, %arg5: memref<8x128xf32, #tpu.memory_space<vmem>>) attributes {dimension_semantics = [#tpu.dimension_semantics<parallel>, #tpu.dimension_semantics<arbitrary>], iteration_bounds = array<i64: 2, 1>, scalar_prefetch = 0 : i64, scratch_operands = 1 : i64, tpu.core_type = #tpu.core_type<tc>, window_params = [{transform_indices = @transform_0, window_bounds = array<i64: 8, 1>}, {transform_indices = @transform_1, window_bounds = array<i64: 256, 128>}, {transform_indices = @transform_2, window_bounds = array<i64: 8, 128>}]} {
    %c0_i32 = arith.constant 0 : i32
    %0 = arith.cmpi eq, %arg1, %c0_i32 : i32
    %1 = arith.extui %0 : i1 to i32
    %c0_i32_0 = arith.constant 0 : i32
    %2 = arith.cmpi ne, %1, %c0_i32_0 : i32
    scf.if %2 {
      %cst_10 = arith.constant 0.000000e+00 : f32
      %21 = vector.broadcast %cst_10 : f32 to vector<8x128xf32>
      %c0_11 = arith.constant 0 : index
      %c0_12 = arith.constant 0 : index
      %22 = vector.load %arg5[%c0_11, %c0_12] : memref<8x128xf32, #tpu.memory_space<vmem>>, vector<8x128xf32>
      tpu.vector_store %arg5[%c0_11, %c0_12], %21 {strides = array<i32>} : memref<8x128xf32, #tpu.memory_space<vmem>>, vector<8x128xf32>,
    } else {
    }
    %c0 = arith.constant 0 : index
    %c0_1 = arith.constant 0 : index
    %3 = vector.load %arg2[%c0, %c0_1] : memref<8x1xi32, #tpu.memory_space<vmem>>, vector<8x1xi32>
    %c256_i32 = arith.constant 256 : i32
    %4 = arith.muli %arg1, %c256_i32 : i32
    %5 = vector.broadcast %4 : i32 to vector<8x1xi32>
    %6 = arith.subi %3, %5 : vector<8x1xi32>
    %7 = tpu.iota {dimensions = array<i32: 1>} : vector<8x256xi32>
    %8 = vector.broadcast %6 : vector<8x1xi32> to vector<8x256xi32>
    %9 = arith.cmpi eq, %7, %8 : vector<8x256xi32>
    %10 = arith.extui %9 : vector<8x256xi1> to vector<8x256xi32>
    %11 = arith.sitofp %10 : vector<8x256xi32> to vector<8x256xf32>
    %12 = arith.truncf %11 : vector<8x256xf32> to vector<8x256xbf16>
    %c0_2 = arith.constant 0 : index
    %c0_3 = arith.constant 0 : index
    %13 = vector.load %arg5[%c0_2, %c0_3] : memref<8x128xf32, #tpu.memory_space<vmem>>, vector<8x128xf32>
    %c0_4 = arith.constant 0 : index
    %c0_5 = arith.constant 0 : index
    %14 = vector.load %arg3[%c0_4, %c0_5] : memref<256x128xbf16, #tpu.memory_space<vmem>>, vector<256x128xbf16>
    %cst = arith.constant dense<0.000000e+00> : vector<8x128xf32>
    %15 = tpu.matmul %12, %14, %cst {dimension_numbers = #tpu.dot_dimension_numbers<[1], [0], [0], [1], [0, 0, 1, 1], [], []>} : vector<8x256xbf16>, vector<256x128xbf16>, vector<8x128xf32> -> vector<8x128xf32>
    %16 = arith.addf %13, %15 : vector<8x128xf32>
    %c0_6 = arith.constant 0 : index
    %c0_7 = arith.constant 0 : index
    %17 = vector.load %arg5[%c0_6, %c0_7] : memref<8x128xf32, #tpu.memory_space<vmem>>, vector<8x128xf32>
    tpu.vector_store %arg5[%c0_6, %c0_7], %16 {strides = array<i32>} : memref<8x128xf32, #tpu.memory_space<vmem>>, vector<8x128xf32>,
    %c0_i32_8 = arith.constant 0 : i32
    %18 = arith.cmpi eq, %arg1, %c0_i32_8 : i32
    %19 = arith.extui %18 : i1 to i32
    %c0_i32_9 = arith.constant 0 : i32
    %20 = arith.cmpi ne, %19, %c0_i32_9 : i32
    scf.if %20 {
      %c0_10 = arith.constant 0 : index
      %c0_11 = arith.constant 0 : index
      %21 = vector.load %arg5[%c0_10, %c0_11] : memref<8x128xf32, #tpu.memory_space<vmem>>, vector<8x128xf32>
      %22 = arith.truncf %21 : vector<8x128xf32> to vector<8x128xbf16>
      %c0_12 = arith.constant 0 : index
      %c0_13 = arith.constant 0 : index
      %23 = vector.load %arg4[%c0_12, %c0_13] : memref<8x128xbf16, #tpu.memory_space<vmem>>, vector<8x128xbf16>
      tpu.vector_store %arg4[%c0_12, %c0_13], %22 {strides = array<i32>} : memref<8x128xbf16, #tpu.memory_space<vmem>>, vector<8x128xbf16>,
    } else {
    }
    return
  }
  func.func @transform_0(%arg0: i32, %arg1: i32) -> (i32, i32) {
    %c0_i32 = arith.constant 0 : i32
    %c0_i32_0 = arith.constant 0 : i32
    return %arg0, %c0_i32 : i32, i32
  }
  func.func @transform_1(%arg0: i32, %arg1: i32) -> (i32, i32) {
    %c0_i32 = arith.constant 0 : i32
    %c0_i32_0 = arith.constant 0 : i32
    return %arg1, %c0_i32 : i32, i32
  }
  func.func @transform_2(%arg0: i32, %arg1: i32) -> (i32, i32) {
    %c0_i32 = arith.constant 0 : i32
    %c0_i32_0 = arith.constant 0 : i32
    return %arg0, %c0_i32 : i32, i32
  }
}

</mosaic_0001>

<bundles_post_ra>
// kernel: tpu_custom_call.1
= control target key start
LH: loop header
LB: loop body
LE: loop exit
PB: predicated region body
PF: predicated region fallthrough
CT: control target
= control target key end

     0   :  { %7 = vsyncpa [#allocation4], 0  ;;  %s898_s0 = inlined_call_operand.vmem [shape: s32[16,1], index: 0, kind: input, shape index: {}]   ;;  %s899_s1 = inlined_call_operand.hbm [shape: bf16[256,128], index: 1, kind: input, shape index: {}]   ;;  %s900_s2 = inlined_call_operand.hbm [shape: bf16[16,128], index: 2, kind: output, shape index: {}]  }
   0x1   :  { %8 = vsyncpa [#allocation5], 0 }
   0x2   :  { %10 = vsyncpa [#allocation5 + $0x1], 0  ;;  %s748_s9 = smov 0   ;;  %s750_s10 = smov 0  }
   0x3   :  { %s752_s11 = smov 0   ;;  %s754_s12 = smov 0  }
   0x4   :  { %s756_s13 = smov 0   ;;  %s758_s14 = smov 0  }
   0x5 LB: > { %s471_s15 = sadd.s32 4294967295, %s725_s14   ;;  %s472_s16 = sadd.s32 4294967294, %s725_s14   ;;  %s725_s14 = sphi %s758_s14, %s16_s14   ;;  %s721_s13 = sphi %s756_s13, %s918_s13   ;;  %s717_s12 = sphi %s754_s12, %s917_s12   ;;  %s713_s11 = sphi %s752_s11, %s916_s11   ;;  %s709_s10 = sphi %s750_s10, %s915_s10   ;;  %s705_s9 = sphi %s748_s9, %s914_s9  }
   0x6   : > { %s28_s17 = sadd.s32 1, %s721_s13  ;;  %s87_s18 = sadd.s32 1, %s713_s11 }
   0x7   : > { %p30_p0 = scmp.ge.s32.totalorder %s28_s17, 2  ;;  %p97_p1 = scmp.ne.s32.totalorder %s713_s11, %s709_s10 }
   0x8   : > { %p98_p2 = scmp.eq.s32.totalorder %s471_s15, 1  ;;  %p103_p3 = scmp.ne.s32.totalorder %s709_s10, %s705_s9 }
   0x9   : > { %s920_s17 = smov (%p30_p0, %s28_s17), 0  ;;  %p104_p5 = scmp.eq.s32.totalorder %s472_s16, 1 }
   0xa   : > { %p788_p4 = por %p98_p2, %p97_p1  ;;  %s84_s20 = ssub.s32 %s721_s13, %s920_s17 }
   0xb   : > { %p473_p6 = scmp.ge.s32.totalorder %s725_s14, 1  ;;  %p85_p7 = scmp.eq.s32.totalorder %s84_s20, 0 }
   0xc   : > { %s905_s19 = scalar_select %p788_p4, 1, 0 }
   0xd   : > { %p795_p8 = por %p104_p5, %p103_p3  ;;  %p111_p9 = scmp.lt.s32.totalorder %s725_s14, 3 }
   0xe   : > { %s801_s22 = scalar_select %p85_p7, %s713_s11, %s87_s18  }
   0xf   : > { %s906_s21 = scalar_select %p795_p8, 1, 0 }
  0x10   : > { %p803_p10 = pnand %p473_p6, %p111_p9  ;;  %p807_p11 = scmp.eq.s32.totalorder %s471_s15, 0 }
  0x11   : > { %s727_s25 = smov [#allocation3]   ;;  %s615_s30 = scalar_lea.hbm %s899_s1, 2048 }
  0x12   : > { %s907_s23 = scalar_select %p803_p10, 1, 0 }
  0x13   : > { %s908_s24 = scalar_select %p807_p11, 1, 0 }
  0x14   : > { %p534_p12 = pneg %p803_p10  ;;  %s126_s26 = sshll.u32 %s727_s25, 4  ;;  %s127_s26 = int_to_ptr.vmem [resolvable:$true] %s126_s26 }
  0x15   : > { %p616_p0 = scmp.ne.s32.totalorder %s899_s1, %s615_s30  ;;  %p622_p5 = scmp.lt.u32.totalorder %s615_s30, %s899_s1 }
  0x16   : > { %p815_p13 = pnand %p807_p11, %p534_p12 }
  0x18   : > { %p617_p1 = pneg %p815_p13 }
  0x1a   : > { %p618_p2 = pnand %p617_p1, %p616_p0 }
  0x1c   : > { %p619_p3 = pneg %p618_p2 }
  0x1e   : > { %p624_p6 = pnand %p622_p5, %p619_p3 }
  0x20   : > { %627 = shalt.err (!%p624_p6)
}
  0x21   : > { %s628_s7 = scalar_lea.vmem %s127_s26, 2048  ;;  %p636_p8 = scmp.lt.s32.totalorder %s127_s26, %s127_s26 }
  0x22   : > { %p629_p7 = scmp.ne.s32.totalorder %s127_s26, %s628_s7  ;;  %p637_p4 = scmp.lt.s32.totalorder %s628_s7, %s628_s7 }
  0x24   : > { %p631_p9 = pnand %p629_p7, %p617_p1  ;;  %p638_p11 = por %p637_p4, %p636_p8 }
  0x26   : > { %p632_p12 = pneg %p631_p9 }
  0x28   : > { %p639_p10 = pnand %p638_p11, %p632_p12 }
  0x2a   : > { %642 = shalt.err (!%p639_p10)
}
  0x2b   : > { %s728_s8 = smov 64   ;;  %s729_s15 = smov 4  }
  0x2c   : > { %537 = dma.hbm_to_vmem [thread:$0]  (!%p815_p13), %s899_s1, 2048, %s127_s26, [#allocation4], %s728_s8, %s728_s8, %s729_s15  }
  0x2d   : > { %p910_p0 = scmp.ne.s32.totalorder %s907_s23, 0 }
  0x2e   : > { %p911_p2 = scmp.ne.s32.totalorder (!%p910_p0), %s908_s24, 0 }
  0x2f   : > { %149 = sbr.rel (%p910_p0) target bundleno = 425 (0x1a9), region = 28 }
  0x36   : > { %696 = dma.done.wait (%p911_p2), [#allocation4], 2048  }
  0x37   : > { %698 = vsyncadd (%p911_p2), [#allocation4], 4294965248  ;;  %p170_p4 = scmp.lt.s32.totalorder %s717_s12, 1  ;;  %v730_v0 = vmov 0   ;;  %v599_v2 = vld [vmem:[#allocation3 + $0x40] sm:$0xff]   ;;  %v601_v4 = vld [vmem:[#allocation3 + $0x48] sm:$0xff]   ;;  %v185_v18 = vlaneseq }
  0x38   : > { %598 = vset.pattern.permute.xlu0 %v730_v0  ;;  %v600_v3 = vld [vmem:[#allocation3] sm:$0xff]   ;;  %506 = vmatprep.subr.bf16.mxu0 %v599_v2  ;;  %v602_v5 = vld [vmem:[#allocation3 + $0x8] sm:$0xff]   ;;  %v603_v6 = vld [vmem:[#allocation3 + $0x50] sm:$0xff]   ;;  %v731_v22 = vmov 1.0|1.0   ;;  %s167_s23 = sand.u32 1, %s709_s10  }
  0x39   : > { %s171_s20 = scalar_select %p170_p4, %s717_s12, 1  ;;  %507 = vmatpush3.bf16.msra.mxu0 %v600_v3  ;;  %v604_v7 = vld [vmem:[#allocation3 + $0x10] sm:$0xff]   ;;  %v605_v8 = vld [vmem:[#allocation3 + $0x58] sm:$0xff]   ;;  %v607_v10 = vld [vmem:[#allocation3 + $0x60] sm:$0xff]   ;;  %v186_v19 = vand.u32 127, %v185_v18 }
  0x3a   : > { %508 = vmatprep.subr.bf16.mxu0 %v601_v4  ;;  %v606_v9 = vld [vmem:[#allocation3 + $0x18] sm:$0xff]   ;;  %v608_v11 = vld [vmem:[#allocation3 + $0x20] sm:$0xff]   ;;  %v609_v12 = vld [vmem:[#allocation3 + $0x68] sm:$0xff]   ;;  %s478_s24 = sshll.u32 %s167_s23, 2  ;;  %s503_s29 = sshll.u32 %s717_s12, 6 }
  0x3b   : > { %s479_s25 = sshll.u32 %s171_s20, 3  ;;  %v610_v13 = vld [vmem:[#allocation3 + $0x28] sm:$0xff]   ;;  %v611_v14 = vld [vmem:[#allocation3 + $0x70] sm:$0xff]   ;;  %v613_v16 = vld [vmem:[#allocation3 + $0x78] sm:$0xff]   ;;  %v187_v20 = vadd.s32 128, %v186_v19  ;;  %s169_s30 = scalar_lea.vmem [#allocation6], %s478_s24 }
  0x3c   : > { %s173_s26 = scalar_lea.vmem %s898_s0, %s479_s25  ;;  %v612_v15 = vld [vmem:[#allocation3 + $0x30] sm:$0xff]   ;;  %v614_v17 = vld [vmem:[#allocation3 + $0x38] sm:$0xff]   ;;  %s390_s3 = sshll.u32 %s169_s30, 4  ;;  %s853_s3 = int_to_ptr.vmem [resolvable:$true] %s390_s3 }
  0x3d   : > { %v181_v1 = vld [vmem:[%s173_s26] sm:$0xff]  ;;  %509 = vmatpush3.bf16.msra.mxu0 %v602_v5  ;;  %s851_s6 = scalar_lea.hbm %s900_s2, %s503_s29  ;;  %s377_s7 = scalar_lea.sflag [#allocation5], %s167_s23 }
  0x3e   : > { %189 = vperm.xlu0 %598, %v181_v1   ;;  %510 = vmatprep.subr.bf16.mxu0 %v603_v6  ;;  %s643_s8 = scalar_lea.vmem %s853_s3, 64  ;;  %p912_p10 = scmp.ne.s32.totalorder %s905_s19, 0 }
  0x3f   : > { %p644_p8 = scmp.ne.s32.totalorder %s853_s3, %s643_s8  ;;  %s732_s12 = smov [#allocation6]  }
  0x40   : > { %s647_s15 = sshll.u32 %s732_s12, 4  ;;  %s648_s15 = int_to_ptr.vmem [resolvable:$false] %s647_s15 }
  0x41   : > { %511 = vmatpush3.bf16.msra.mxu0 %v604_v7  ;;  %p645_p11 = pnand %p644_p8, %p912_p10  ;;  %s649_s16 = scalar_lea.vmem %s648_s15, 128 }
  0x42   : > { %512 = vmatprep.subr.bf16.mxu0 %v605_v8  ;;  %p650_p1 = scmp.lt.s32.totalorder %s853_s3, %s648_s15  ;;  %p651_p3 = scmp.lt.s32.totalorder %s649_s16, %s643_s8 }
  0x43   : > { %p646_p13 = pneg %p645_p11 }
  0x44   : > { %p652_p5 = por %p651_p3, %p650_p1 }
  0x45   : > { %513 = vmatpush3.bf16.msra.mxu0 %v606_v9 }
  0x46   : > { %514 = vmatprep.subr.bf16.mxu0 %v607_v10  ;;  %p653_p6 = pnand %p652_p5, %p646_p13 }
  0x49   : > { %515 = vmatpush3.bf16.msra.mxu0 %v608_v11 }
  0x4a   : > { %516 = vmatprep.subr.bf16.mxu0 %v609_v12 }
  0x4d   : > { %517 = vmatpush3.bf16.msra.mxu0 %v610_v13 }
  0x4e   : > { %518 = vmatprep.subr.bf16.mxu0 %v611_v14 }
  0x51   : > { %519 = vmatpush3.bf16.msra.mxu0 %v612_v15 }
  0x52   : > { %520 = vmatprep.subr.bf16.mxu0 %v613_v16 }
  0x55   : > { %521 = vmatpush3.bf16.msra.mxu0 %v614_v17 }
  0xbd   : > { %v190_v21 = vpop.permute.xlu0 %189 }
  0xbe   : > { %vm191_vm0 = vcmp.eq.s32.totalorder %v186_v19, %v190_v21  ;;  %vm192_vm1 = vcmp.eq.s32.totalorder %v187_v20, %v190_v21 }
  0xbf   : > { %vm500_vm2 = vmpackc.low %vm191_vm0, %vm191_vm0 }
  0xc0   : > { %vm498_vm3 = vmpackc.low %vm192_vm1, %vm192_vm1 }
  0xc1   : > { %499 = vmatprep.mubr.msk.bf16.mxu0 %vm498_vm3, %v731_v22 }
  0xc2   : > { %501 = vmatmul.mubr.msk.bf16.vlgmr.msra.gmra.mrb[0].mxu0 %vm500_vm2, %v731_v22 }
 0x195   : > { %v522_v23 = vpop.f32.mrb[0].mxu0 }
 0x196   : > { %v523_v24 = vpop.f32.mrb[1].mxu0 }
 0x197   : > { %v524_v25 = vadd.f32 %v523_v24, %v522_v23  ;;  %v525_v26 = vpop.f32.mrb[2].mxu0 }
 0x198   : > { %v526_v27 = vpop.f32.mrb[3].mxu0 }
 0x199   : > { %v374_v28 = vpack.c.bf16 %v524_v25, %v524_v25 }
 0x19b   : > { %375 = vst [vmem:[%s169_s30] sm:$0xf] %v374_v28 }
 0x19c   : > { %656 = shalt.err (!%p653_p6)
}
 0x19d   : > { %s657_s18 = scalar_lea.hbm %s851_s6, 64  ;;  %s661_s27 = scalar_lea.hbm %s900_s2, 128 }
 0x19e   : > { %p658_p7 = scmp.ne.s32.totalorder %s851_s6, %s657_s18  ;;  %p662_p0 = scmp.lt.u32.totalorder %s851_s6, %s900_s2 }
 0x19f   : > { %p663_p2 = scmp.lt.u32.totalorder %s661_s27, %s657_s18  ;;  %p665_p8 = scmp.lt.u32.totalorder %s657_s18, %s851_s6 }
 0x1a0   : > { %p659_p9 = pnand %p658_p7, %p912_p10 }
 0x1a1   : > { %p664_p4 = por %p663_p2, %p662_p0 }
 0x1a2   : > { %p660_p12 = pneg %p659_p9 }
 0x1a3   : > { %p666_p11 = por %p665_p8, %p664_p4 }
 0x1a5   : > { %p667_p13 = pnand %p666_p11, %p660_p12 }
 0x1a7   : > { %670 = shalt.err (!%p667_p13)
}
 0x1a8   : > { %532 = dma.vmem_to_hbm [thread:$0]  (%p912_p10), %s853_s3, 64, %s851_s6, %s377_s7  }
 0x1a9 PF: > { %p544_p1 = scmp.ge.s32.totalorder %s725_s14, 2  ;;  %s402_s23 = sand.u32 1, %s705_s9  }
 0x1aa   : > { %p913_p3 = scmp.ne.s32.totalorder %s906_s21, 0  ;;  %s403_s24 = scalar_lea.sflag [#allocation5], %s402_s23 }
 0x1ac   : > { %p539_p5 = pnand %p544_p1, %p913_p3 }
 0x1ae   : > { %700 = dma.done.wait (!%p539_p5), %s403_s24, 64  }
 0x1af   : > { %702 = vsyncadd (!%p539_p5), %s403_s24, 4294967232  ;;  %s16_s14 = sadd.s32 1, %s725_s14   ;;  %s914_s9 = smov %s709_s10 }
 0x1b0   : > { %p13_p6 = scmp.ge.s32.totalorder %s16_s14, 4   ;;  %s915_s10 = smov %s713_s11 }
 0x1b1   : > { %s916_s11 = smov %s801_s22  ;;  %s917_s12 = smov %s721_s13 }
 0x1b2   : > { %s918_s13 = smov %s920_s17  ;;  %15 = sbr.rel (!%p13_p6) target bundleno = 5 (0x5), region = 77 }
 0x1b9   :  { %408 = vsyncpa [#allocation4], 1 }
 0x1ba   :  { %410 = vsyncpa [#allocation4 + $0x1], 1 }
 0x1bb   :  { %411 = vsyncpa [#allocation5], 1 }
 0x1bc   :  { %413 = vsyncpa [#allocation5 + $0x1], 1 }

</bundles_post_ra>
